<compile_context>
chip_gen: v5e
topology: v5e:2x2
jax: 0.10.0
libtpu: 0.0.40
codegen_flags: <defaults>
</compile_context>

<pallas_src>
import functools

import jax
import jax.numpy as jnp
from jax import lax
from jax.experimental import pallas as pl
from jax.experimental.pallas import tpu as pltpu


def _round_up(x, m):
    return ((x + m - 1) // m) * m


def _sublane(dtype):
    itemsize = jnp.dtype(dtype).itemsize
    if itemsize >= 4:
        return 8
    if itemsize == 2:
        return 16
    return 32


def _vmem_budget_bytes():
    """Usable scoped-VMEM budget for this generation (with headroom)."""
    try:
        cap = pltpu.get_tpu_info().vmem_capacity_bytes
    except Exception:
        cap = 64 * 1024 * 1024  # conservative (v7x) fallback
    return int(min(cap - (8 << 20), 100 << 20))


def _pick_tk(h, cap=512):
    """Contraction tile for the dense stage: a multiple of 128 (<= cap) that
    divides H, else the full H (single K step)."""
    if h <= cap or h % 128 != 0:
        return h
    t = cap - (cap % 128)
    while t >= 128:
        if h % t == 0:
            return t
        t -= 128
    # TODO(synk): for large H with no 128-multiple divisor <= cap, W1 falls
    # back to a single full-H block; pad H's contraction dim instead.
    return h


def _stage1_vmem(tm, tk, h, x_sz, w1_sz, hn_sz):
    # x tile + W1 tile (double-buffered) + params + hn out tile + f32 acc
    return (2 * tm * tk * x_sz + 2 * tk * h * w1_sz + 8 * h * 4
            + 2 * tm * h * hn_sz + tm * h * 4)


def _stage2_vmem(tm, tv, h, hn_sz, w2_sz, out_sz):
    return (2 * tm * h * hn_sz + 2 * h * tv * w2_sz
            + 2 * tm * tv * out_sz + 2 * tv * 4)


def _pick_tiles(n, h, v, tk, x_sz, w1_sz, hn_sz, w2_sz, out_sz, sub, budget):
    """Pick (tm, tv): prefer large tm (reduces W2 re-streaming), then large tv
    (lane-dense writes, fewer grid steps), subject to the VMEM budget."""
    tm_max = _round_up(min(max(n, 1), 1024), sub)
    tm_opts = sorted({min(t, tm_max)
                      for t in (1024, 512, 256, 128, 64, 32, 16, 8)
                      if min(t, tm_max) >= sub}, reverse=True)
    tv_cap = _round_up(v, 128)
    tv_opts = (2048, 1024, 512, 256, 128)
    for tm in tm_opts:
        if _stage1_vmem(tm, tk, h, x_sz, w1_sz, hn_sz) > budget:
            continue
        for tv in tv_opts:
            tv_eff = min(tv, tv_cap)
            if _stage2_vmem(tm, tv_eff, h, hn_sz, w2_sz, out_sz) <= budget:
                return tm, tv_eff
    return sub, 128


def _dense_gelu_ln_kernel(x_ref, w1_ref, b1_ref, g_ref, beta_ref, hn_ref,
                          acc_ref, *, eps):
    # x_ref: (TM, TK)  w1_ref: (TK, H)  b1/g/beta: (1, H)
    # hn_ref: (TM, H) in matmul dtype   acc_ref: (TM, H) f32 scratch
    k = pl.program_id(1)

    @pl.when(k == 0)
    def _():
        acc_ref[...] = jnp.zeros_like(acc_ref)

    acc_ref[...] += jnp.dot(x_ref[...], w1_ref[...],
                            preferred_element_type=jnp.float32)

    @pl.when(k == pl.num_programs(1) - 1)
    def _():
        h = acc_ref[...] + b1_ref[...].astype(jnp.float32)
        # exact (erf-based) gelu, matching transformers' gelu
        h = 0.5 * h * (1.0 + lax.erf(h * 0.7071067811865476))
        # two-pass layernorm over the last dim (f32 math)
        mu = jnp.mean(h, axis=-1, keepdims=True)
        d = h - mu
        var = jnp.mean(d * d, axis=-1, keepdims=True)
        hn = d * lax.rsqrt(var + eps)
        hn = hn * g_ref[...].astype(jnp.float32) + beta_ref[...].astype(jnp.float32)
        hn_ref[...] = hn.astype(hn_ref.dtype)


def _decoder_kernel(hn_ref, w2_ref, b2_ref, o_ref):
    # hn_ref: (TM, H)  w2_ref: (H, TV)  b2_ref: (1, TV)  o_ref: (TM, TV)
    out = jnp.dot(hn_ref[...], w2_ref[...], preferred_element_type=jnp.float32)
    out = out + b2_ref[...].astype(jnp.float32)
    o_ref[...] = out.astype(o_ref.dtype)


def lm_head(features, params, *, eps=1e-12, tm=None, tv=None, tk=None,
            out_dtype=None, vmem_limit_bytes=None):
    """features: (batch, seq, hidden) -> logits (batch, seq, vocab)."""
    w1, b1, gamma, beta, w2, b2 = params
    B, S, H = features.shape
    V = w2.shape[1]
    N = B * S

    x_dt = features.dtype
    w2_dt = w2.dtype
    hn_dt = w2_dt          # hn stored once in matmul dtype
    if out_dtype is None:
        out_dtype = features.dtype   # pass jnp.bfloat16 to halve logits traffic

    budget = _vmem_budget_bytes() if vmem_limit_bytes is None else int(vmem_limit_bytes)
    if vmem_limit_bytes is None:
        vmem_limit_bytes = budget

    sub = max(_sublane(x_dt), _sublane(hn_dt))
    if tk is None:
        tk = _pick_tk(H)
    x_sz = jnp.dtype(x_dt).itemsize
    w1_sz = jnp.dtype(w1.dtype).itemsize
    hn_sz = jnp.dtype(hn_dt).itemsize
    w2_sz = jnp.dtype(w2_dt).itemsize
    out_sz = jnp.dtype(out_dtype).itemsize

    tm_auto, tv_auto = _pick_tiles(N, H, V, tk, x_sz, w1_sz, hn_sz, w2_sz,
                                   out_sz, sub, budget)
    if tm is None:
        tm = tm_auto
    if tv is None:
        tv = tv_auto
    assert tv % 128 == 0 and tm % 8 == 0 and H % tk == 0

    N_pad = _round_up(N, tm)
    V_pad = _round_up(V, tv)

    x2d = features.reshape(N, H)
    if N_pad != N:
        x2d = jnp.pad(x2d, ((0, N_pad - N), (0, 0)))
    w2p = w2 if V_pad == V else jnp.pad(w2, ((0, 0), (0, V_pad - V)))
    b2p = b2 if V_pad == V else jnp.pad(b2, ((0, V_pad - V),))

    b1_2d = b1.reshape(1, H)
    g_2d = gamma.reshape(1, H)
    beta_2d = beta.reshape(1, H)
    b2_2d = b2p.reshape(1, V_pad)

    # ---- Stage 1: dense -> gelu -> layernorm (W1 streamed over K axis) ----
    hn = pl.pallas_call(
        functools.partial(_dense_gelu_ln_kernel, eps=float(eps)),
        out_shape=jax.ShapeDtypeStruct((N_pad, H), hn_dt),
        grid_spec=pltpu.PrefetchScalarGridSpec(
            num_scalar_prefetch=0,
            grid=(N_pad // tm, H // tk),               # K innermost
            in_specs=[
                pl.BlockSpec((tm, tk), lambda i, k: (i, k)),   # x row/K tile
                pl.BlockSpec((tk, H), lambda i, k: (k, 0)),    # W1 K tile
                pl.BlockSpec((1, H), lambda i, k: (0, 0)),     # b1
                pl.BlockSpec((1, H), lambda i, k: (0, 0)),     # gamma
                pl.BlockSpec((1, H), lambda i, k: (0, 0)),     # beta
            ],
            out_specs=pl.BlockSpec((tm, H), lambda i, k: (i, 0)),
            scratch_shapes=[pltpu.VMEM((tm, H), jnp.float32)],
        ),
        compiler_params=pltpu.CompilerParams(
            dimension_semantics=("parallel", "arbitrary"),
            vmem_limit_bytes=vmem_limit_bytes,
        ),
    )(x2d, w1, b1_2d, g_2d, beta_2d)

    # ---- Stage 2: decoder  hn @ W2 + b2  (dominant FLOPs / HBM stream) ----
    # TODO(synk): optional int8 (v5e/v6e) or fp8 (v7x) W2 with fused dequant
    # would halve the dominant W2 HBM stream.
    logits = pl.pallas_call(
        _decoder_kernel,
        out_shape=jax.ShapeDtypeStruct((N_pad, V_pad), out_dtype),
        grid_spec=pltpu.PrefetchScalarGridSpec(
            num_scalar_prefetch=0,
            grid=(N_pad // tm, V_pad // tv),
            in_specs=[
                pl.BlockSpec((tm, H), lambda i, j: (i, 0)),    # hn row tile
                pl.BlockSpec((H, tv), lambda i, j: (0, j)),    # W2 vocab tile
                pl.BlockSpec((1, tv), lambda i, j: (0, j)),    # b2 vocab tile
            ],
            out_specs=pl.BlockSpec((tm, tv), lambda i, j: (i, j)),
        ),
        compiler_params=pltpu.CompilerParams(
            # both axes independent -> megacore may shard vocab when N is small
            dimension_semantics=("parallel", "parallel"),
            vmem_limit_bytes=vmem_limit_bytes,
        ),
    )(hn, w2p, b2_2d)

    if V_pad != V:
        logits = logits[:, :V]
    if N_pad != N:
        logits = logits[:N]
    return logits.reshape(B, S, V)


def _reference(features, params, eps=1e-12):
    w1, b1, gamma, beta, w2, b2 = params
    x = features.astype(jnp.float32)
    h = x @ w1 + b1
    h = 0.5 * h * (1.0 + lax.erf(h / jnp.sqrt(2.0)))
    mu = jnp.mean(h, axis=-1, keepdims=True)
    var = jnp.mean((h - mu) ** 2, axis=-1, keepdims=True)
    hn = (h - mu) * lax.rsqrt(var + eps) * gamma + beta
    return hn @ w2 + b2


if __name__ == "__main__":
    # small config implied by the module: hidden_size, vocab_size, layer_norm_eps
    batch, seq, hidden, vocab = 2, 8, 32, 128
    eps = 1e-12

    key = jax.random.PRNGKey(0)
    k_feat, k_w1, k_b1, k_w2 = jax.random.split(key, 4)

    features = jax.random.normal(k_feat, (batch, seq, hidden), dtype=jnp.float32)

    # deterministic synthetic parameters (nn.Linear-like scale)
    w1 = jax.random.normal(k_w1, (hidden, hidden), dtype=jnp.float32) * (hidden ** -0.5)
    b1 = jax.random.normal(k_b1, (hidden,), dtype=jnp.float32) * 0.01
    gamma = jnp.ones((hidden,), dtype=jnp.float32)            # LayerNorm weight init
    beta = jnp.zeros((hidden,), dtype=jnp.float32)            # LayerNorm bias init
    w2 = jax.random.normal(k_w2, (hidden, vocab), dtype=jnp.float32) * (hidden ** -0.5)
    b2 = jnp.zeros((vocab,), dtype=jnp.float32)               # self.bias = zeros(vocab), tied

    params = (w1, b1, gamma, beta, w2, b2)

    logits = lm_head(features, params, eps=eps)
    jax.block_until_ready(logits)

    ref = _reference(features, params, eps=eps)
    assert logits.shape == (batch, seq, vocab)
    assert jnp.allclose(logits, ref, atol=1e-4, rtol=1e-4), "mismatch vs reference"

    print("KERNEL_OK")
</pallas_src>

<mosaic_0001>
module attributes {stable_mosaic.version = 11 : i64} {
  func.func @_dense_gelu_ln_kernel(%arg0: i32, %arg1: i32, %arg2: memref<16x32xf32, #tpu.memory_space<vmem>>, %arg3: memref<32x32xf32, #tpu.memory_space<vmem>>, %arg4: memref<1x32xf32, #tpu.memory_space<vmem>>, %arg5: memref<1x32xf32, #tpu.memory_space<vmem>>, %arg6: memref<1x32xf32, #tpu.memory_space<vmem>>, %arg7: memref<16x32xf32, #tpu.memory_space<vmem>>, %arg8: memref<16x32xf32, #tpu.memory_space<vmem>>) attributes {dimension_semantics = [#tpu.dimension_semantics<parallel>, #tpu.dimension_semantics<arbitrary>], iteration_bounds = array<i64: 1, 1>, scalar_prefetch = 0 : i64, scratch_operands = 1 : i64, tpu.core_type = #tpu.core_type<tc>, window_params = [{transform_indices = @transform_0, window_bounds = array<i64: 16, 32>}, {transform_indices = @transform_1, window_bounds = array<i64: 32, 32>}, {pipeline_mode = #tpu.pipeline_mode<synchronous>, transform_indices = @transform_2, window_bounds = array<i64: 1, 32>}, {pipeline_mode = #tpu.pipeline_mode<synchronous>, transform_indices = @transform_3, window_bounds = array<i64: 1, 32>}, {pipeline_mode = #tpu.pipeline_mode<synchronous>, transform_indices = @transform_4, window_bounds = array<i64: 1, 32>}, {transform_indices = @transform_5, window_bounds = array<i64: 16, 32>}]} {
    %c0_i32 = arith.constant 0 : i32
    %0 = arith.cmpi eq, %arg1, %c0_i32 : i32
    %1 = arith.extui %0 : i1 to i32
    %c0_i32_0 = arith.constant 0 : i32
    %2 = arith.cmpi ne, %1, %c0_i32_0 : i32
    scf.if %2 {
      %cst_10 = arith.constant 0.000000e+00 : f32
      %12 = vector.broadcast %cst_10 : f32 to vector<16x32xf32>
      %c0_11 = arith.constant 0 : index
      %c0_12 = arith.constant 0 : index
      %13 = vector.load %arg8[%c0_11, %c0_12] : memref<16x32xf32, #tpu.memory_space<vmem>>, vector<16x32xf32>
      tpu.vector_store %arg8[%c0_11, %c0_12], %12 {strides = array<i32>} : memref<16x32xf32, #tpu.memory_space<vmem>>, vector<16x32xf32>,
    } else {
    }
    %c0 = arith.constant 0 : index
    %c0_1 = arith.constant 0 : index
    %3 = vector.load %arg8[%c0, %c0_1] : memref<16x32xf32, #tpu.memory_space<vmem>>, vector<16x32xf32>
    %c0_2 = arith.constant 0 : index
    %c0_3 = arith.constant 0 : index
    %4 = vector.load %arg2[%c0_2, %c0_3] : memref<16x32xf32, #tpu.memory_space<vmem>>, vector<16x32xf32>
    %c0_4 = arith.constant 0 : index
    %c0_5 = arith.constant 0 : index
    %5 = vector.load %arg3[%c0_4, %c0_5] : memref<32x32xf32, #tpu.memory_space<vmem>>, vector<32x32xf32>
    %cst = arith.constant dense<0.000000e+00> : vector<16x32xf32>
    %6 = tpu.matmul %4, %5, %cst {dimension_numbers = #tpu.dot_dimension_numbers<[1], [0], [0], [1], [0, 0, 1, 1], [], []>} : vector<16x32xf32>, vector<32x32xf32>, vector<16x32xf32> -> vector<16x32xf32>
    %7 = arith.addf %3, %6 : vector<16x32xf32>
    %c0_6 = arith.constant 0 : index
    %c0_7 = arith.constant 0 : index
    %8 = vector.load %arg8[%c0_6, %c0_7] : memref<16x32xf32, #tpu.memory_space<vmem>>, vector<16x32xf32>
    tpu.vector_store %arg8[%c0_6, %c0_7], %7 {strides = array<i32>} : memref<16x32xf32, #tpu.memory_space<vmem>>, vector<16x32xf32>,
    %c0_i32_8 = arith.constant 0 : i32
    %9 = arith.cmpi eq, %arg1, %c0_i32_8 : i32
    %10 = arith.extui %9 : i1 to i32
    %c0_i32_9 = arith.constant 0 : i32
    %11 = arith.cmpi ne, %10, %c0_i32_9 : i32
    scf.if %11 {
      %c0_10 = arith.constant 0 : index
      %c0_11 = arith.constant 0 : index
      %12 = vector.load %arg8[%c0_10, %c0_11] : memref<16x32xf32, #tpu.memory_space<vmem>>, vector<16x32xf32>
      %c0_12 = arith.constant 0 : index
      %c0_13 = arith.constant 0 : index
      %13 = vector.load %arg4[%c0_12, %c0_13] : memref<1x32xf32, #tpu.memory_space<vmem>>, vector<1x32xf32>
      %14 = vector.broadcast %13 : vector<1x32xf32> to vector<16x32xf32>
      %15 = arith.addf %12, %14 : vector<16x32xf32>
      %cst_14 = arith.constant 5.000000e-01 : f32
      %16 = vector.broadcast %cst_14 : f32 to vector<16x32xf32>
      %17 = arith.mulf %16, %15 : vector<16x32xf32>
      %cst_15 = arith.constant 0.707106769 : f32
      %18 = vector.broadcast %cst_15 : f32 to vector<16x32xf32>
      %19 = arith.mulf %15, %18 : vector<16x32xf32>
      %20 = math.erf %19 : vector<16x32xf32>
      %cst_16 = arith.constant 1.000000e+00 : f32
      %21 = vector.broadcast %cst_16 : f32 to vector<16x32xf32>
      %22 = arith.addf %21, %20 : vector<16x32xf32>
      %23 = arith.mulf %17, %22 : vector<16x32xf32>
      %cst_17 = arith.constant dense<0.000000e+00> : vector<16xf32>
      %24 = vector.multi_reduction <add>, %23, %cst_17 [1] : vector<16x32xf32> to vector<16xf32>
      %25 = vector.shape_cast %24 : vector<16xf32> to vector<16x1xf32>
      %cst_18 = arith.constant 3.200000e+01 : f32
      %26 = vector.broadcast %cst_18 : f32 to vector<16x1xf32>
      %27 = arith.divf %25, %26 : vector<16x1xf32>
      %28 = vector.broadcast %27 : vector<16x1xf32> to vector<16x32xf32>
      %29 = arith.subf %23, %28 : vector<16x32xf32>
      %30 = arith.mulf %29, %29 : vector<16x32xf32>
      %cst_19 = arith.constant dense<0.000000e+00> : vector<16xf32>
      %31 = vector.multi_reduction <add>, %30, %cst_19 [1] : vector<16x32xf32> to vector<16xf32>
      %32 = vector.shape_cast %31 : vector<16xf32> to vector<16x1xf32>
      %cst_20 = arith.constant 3.200000e+01 : f32
      %33 = vector.broadcast %cst_20 : f32 to vector<16x1xf32>
      %34 = arith.divf %32, %33 : vector<16x1xf32>
      %cst_21 = arith.constant 9.99999996E-13 : f32
      %35 = vector.broadcast %cst_21 : f32 to vector<16x1xf32>
      %36 = arith.addf %34, %35 : vector<16x1xf32>
      %37 = math.rsqrt %36 : vector<16x1xf32>
      %38 = vector.broadcast %37 : vector<16x1xf32> to vector<16x32xf32>
      %39 = arith.mulf %29, %38 : vector<16x32xf32>
      %c0_22 = arith.constant 0 : index
      %c0_23 = arith.constant 0 : index
      %40 = vector.load %arg5[%c0_22, %c0_23] : memref<1x32xf32, #tpu.memory_space<vmem>>, vector<1x32xf32>
      %41 = vector.broadcast %40 : vector<1x32xf32> to vector<16x32xf32>
      %42 = arith.mulf %39, %41 : vector<16x32xf32>
      %c0_24 = arith.constant 0 : index
      %c0_25 = arith.constant 0 : index
      %43 = vector.load %arg6[%c0_24, %c0_25] : memref<1x32xf32, #tpu.memory_space<vmem>>, vector<1x32xf32>
      %44 = vector.broadcast %43 : vector<1x32xf32> to vector<16x32xf32>
      %45 = arith.addf %42, %44 : vector<16x32xf32>
      %c0_26 = arith.constant 0 : index
      %c0_27 = arith.constant 0 : index
      %46 = vector.load %arg7[%c0_26, %c0_27] : memref<16x32xf32, #tpu.memory_space<vmem>>, vector<16x32xf32>
      tpu.vector_store %arg7[%c0_26, %c0_27], %45 {strides = array<i32>} : memref<16x32xf32, #tpu.memory_space<vmem>>, vector<16x32xf32>,
    } else {
    }
    return
  }
  func.func @transform_0(%arg0: i32, %arg1: i32) -> (i32, i32) {
    %c0_i32 = arith.constant 0 : i32
    return %arg0, %arg1 : i32, i32
  }
  func.func @transform_1(%arg0: i32, %arg1: i32) -> (i32, i32) {
    %c0_i32 = arith.constant 0 : i32
    %c0_i32_0 = arith.constant 0 : i32
    return %arg1, %c0_i32 : i32, i32
  }
  func.func @transform_2(%arg0: i32, %arg1: i32) -> (i32, i32) {
    %c0_i32 = arith.constant 0 : i32
    %c0_i32_0 = arith.constant 0 : i32
    %c0_i32_1 = arith.constant 0 : i32
    return %c0_i32, %c0_i32_0 : i32, i32
  }
  func.func @transform_3(%arg0: i32, %arg1: i32) -> (i32, i32) {
    %c0_i32 = arith.constant 0 : i32
    %c0_i32_0 = arith.constant 0 : i32
    %c0_i32_1 = arith.constant 0 : i32
    return %c0_i32, %c0_i32_0 : i32, i32
  }
  func.func @transform_4(%arg0: i32, %arg1: i32) -> (i32, i32) {
    %c0_i32 = arith.constant 0 : i32
    %c0_i32_0 = arith.constant 0 : i32
    %c0_i32_1 = arith.constant 0 : i32
    return %c0_i32, %c0_i32_0 : i32, i32
  }
  func.func @transform_5(%arg0: i32, %arg1: i32) -> (i32, i32) {
    %c0_i32 = arith.constant 0 : i32
    %c0_i32_0 = arith.constant 0 : i32
    return %arg0, %c0_i32 : i32, i32
  }
}

</mosaic_0001>

<bundles_post_ra>
// kernel: tpu_custom_call.1
= control target key start
LH: loop header
LB: loop body
LE: loop exit
PB: predicated region body
PF: predicated region fallthrough
CT: control target
= control target key end

     0   :  { %10 = vsyncpa [#allocation4], 0  ;;  %s486_s0 = inlined_call_operand.hbm [shape: f32[16,32], index: 0, kind: input, shape index: {}]   ;;  %s487_s1 = inlined_call_operand.hbm [shape: f32[32,32], index: 1, kind: input, shape index: {}]   ;;  %s488_s2 = inlined_call_operand.vmem [shape: f32[1,32], index: 2, kind: input, shape index: {}]   ;;  %s489_s3 = inlined_call_operand.vmem [shape: f32[1,32], index: 3, kind: input, shape index: {}]   ;;  %s490_s4 = inlined_call_operand.vmem [shape: f32[1,32], index: 4, kind: input, shape index: {}]   ;;  %s491_s5 = inlined_call_operand.hbm [shape: f32[16,32], index: 5, kind: output, shape index: {}]  }
   0x1   :  { %11 = vsyncpa [#allocation7], 0 }
   0x2   :  { %12 = vsyncpa [#allocation5], 0  ;;  %s17_s20 = sshll.u32 %s486_s0, 4  ;;  %s392_s21 = smov [#allocation3]   ;;  %s18_s20 = int_to_ptr.hbm [resolvable:$true] %s17_s20 }
   0x3   :  { %s19_s22 = sshll.u32 %s392_s21, 4  ;;  %s30_s25 = sshll.u32 %s487_s1, 4  ;;  %s20_s22 = int_to_ptr.vmem [resolvable:$true] %s19_s22  ;;  %s31_s25 = int_to_ptr.hbm [resolvable:$true] %s30_s25 }
   0x4   :  { %s393_s26 = smov 128   ;;  %s394_s27 = smov 8  }
   0x5   :  { %25 = dma.hbm_to_vmem [thread:$0]  %s18_s20, 256, %s20_s22, [#allocation4], %s393_s26, %s393_s26, %s394_s27  }
   0x6   :  { %s395_s28 = smov [#allocation6]  }
   0x7   :  { %s32_s29 = sshll.u32 %s395_s28, 4  ;;  %s33_s29 = int_to_ptr.vmem [resolvable:$true] %s32_s29 }
   0x8   :  { %38 = dma.hbm_to_vmem [thread:$0]  %s31_s25, 512, %s33_s29, [#allocation7], %s393_s26, %s393_s26, %s394_s27  }
   0x9   :  { %386 = dma.done.wait [#allocation4], 256  }
   0xa   :  { %387 = vsyncadd [#allocation4], 4294967040 }
   0xb   :  { %388 = dma.done.wait [#allocation7], 512  }
   0xc   :  { %389 = vsyncadd [#allocation7], 4294966784  ;;  %vm57_vm0 = vcmask 261120   ;;  %v396_v0 = vmov 0.0   ;;  %v67_v1 = vld [vmem:[#allocation6 + $0x18] sm:$0xff]  ;;  %v66_v2 = vld [vmem:[#allocation6 + $0x10] sm:$0xff] }
   0xd   :  { %58 = vst.msk [vmem:[#allocation2] sm:$0xff] %vm57_vm0, %v396_v0  ;;  %87 = vmatpush.msra.mxu0 %v67_v1  ;;  %290 = vmatpush.msra.mxu1 %v67_v1  ;;  %v65_v3 = vld [vmem:[#allocation6 + $0x8] sm:$0xff]  ;;  %v64_v4 = vld [vmem:[#allocation6] sm:$0xff]  ;;  %v62_v5 = vld [vmem:[#allocation3] sm:$0xff]  ;;  %s272_s11 = sshll.u32 %s491_s5, 4  ;;  %s273_s11 = int_to_ptr.hbm [resolvable:$true] %s272_s11 }
   0xe   :  { %59 = vst.msk [vmem:[#allocation2 + $0x8] sm:$0xff] %vm57_vm0, %v396_v0  ;;  %v63_v6 = vld [vmem:[#allocation3 + $0x8] sm:$0xff]  ;;  %v301_v13 = vld [vmem:[%s488_s2] ss:$0 sm:$0xff] }
   0xf   :  { %88 = vmatpush.msra.mxu0 %v66_v2  ;;  %291 = vmatpush.msra.mxu1 %v66_v2 }
  0x11   :  { %89 = vmatpush.msra.mxu0 %v65_v3  ;;  %292 = vmatpush.msra.mxu1 %v65_v3 }
  0x13   :  { %90 = vmatpush.msra.mxu0 %v64_v4  ;;  %293 = vmatpush.msra.mxu1 %v64_v4 }
  0x14   :  { %286 = vmatmul.msk.f32.vlgmr.msra.gmra.mxu0 %vm57_vm0, %v62_v5  ;;  %287 = vmatmul.msk.f32.vlgmr.msra.gmra.mxu1 %vm57_vm0, %v63_v6  ;;  %v60_v7 = vld [vmem:[#allocation2] sm:$0xff] }
  0x15   :  { %v61_v8 = vld [vmem:[#allocation2 + $0x8] sm:$0xff] }
  0x91   :  { %v92_v9 = vpop.f32.mrf.mxu0  ;;  %v95_v10 = vpop.f32.mrf.mxu1 }
  0x92   :  { %v98_v11 = vadd.f32 %v92_v9, %v60_v7  ;;  %v99_v12 = vadd.f32 %v95_v10, %v61_v8 }
  0x94   :  { %100 = vst.msk [vmem:[#allocation2] sm:$0xff] %vm57_vm0, %v98_v11 }
  0x95   :  { %101 = vst.msk [vmem:[#allocation2 + $0x8] sm:$0xff] %vm57_vm0, %v99_v12 }
  0x9b   :  { %v105_v14 = vld [vmem:[#allocation2] sm:$0xff] }
  0x9c   :  { %v450_v15 = vadd.f32 %v301_v13, %v105_v14  ;;  %v106_v16 = vld [vmem:[#allocation2 + $0x8] sm:$0xff] }
  0x9d   :  { %v452_v17 = vadd.f32 %v301_v13, %v106_v16 }
  0x9e   :  { %v455_v18 = vmul.f32 0.70710677, %v450_v15 }
  0x9f   :  { %v458_v19 = vmul.f32 0.70710677, %v452_v17 }
  0xa0   :  { %v117_v20 = vmul.f32 %v455_v18, %v455_v18 }
  0xa1   :  { %v157_v21 = vmul.f32 %v458_v19, %v458_v19 }
  0xa2   :  { %v118_v22 = vmin.f32 %v117_v20, 16.0 }
  0xa3   :  { %v158_v23 = vmin.f32 %v157_v21, 16.0 }
  0xa4   :  { %v119_v24 = vmul.f32 2.1237322e-06, %v118_v22  ;;  %v130_v25 = vmul.f32 3.8918573e-05, %v118_v22 }
  0xa5   :  { %v159_v26 = vmul.f32 2.1237322e-06, %v158_v23  ;;  %v170_v27 = vmul.f32 3.8918573e-05, %v158_v23 }
  0xa6   :  { %v120_v28 = vadd.f32 0.00028619796, %v119_v24  ;;  %v131_v29 = vadd.f32 0.001143296, %v130_v25 }
  0xa7   :  { %v160_v30 = vadd.f32 0.00028619796, %v159_v26  ;;  %v171_v31 = vadd.f32 0.001143296, %v170_v27 }
  0xa8   :  { %v121_v32 = vmul.f32 %v120_v28, %v118_v22  ;;  %v132_v33 = vmul.f32 %v131_v29, %v118_v22  ;;  %v113_v29 = vmul.f32 0.5, %v450_v15 }
  0xa9   :  { %v161_v34 = vmul.f32 %v160_v30, %v158_v23  ;;  %v172_v35 = vmul.f32 %v171_v31, %v158_v23 }
  0xaa   :  { %v122_v36 = vadd.f32 0.0036580483, %v121_v32  ;;  %v133_v37 = vadd.f32 0.014752088, %v132_v33 }
  0xab   :  { %v173_v38 = vadd.f32 0.014752088, %v172_v35  ;;  %v162_v40 = vadd.f32 0.0036580483, %v161_v34  ;;  %v114_v34 = vmul.f32 0.5, %v452_v17 }
  0xac   :  { %v134_v39 = vmul.f32 %v133_v37, %v118_v22  ;;  %v123_v42 = vmul.f32 %v122_v36, %v118_v22  ;;  %v397_v36 = vmov 32.0  }
  0xad   :  { %v174_v41 = vmul.f32 %v173_v38, %v158_v23  ;;  %v163_v46 = vmul.f32 %v162_v40, %v158_v23 }
  0xae   :  { %v135_v43 = vadd.f32 0.112945676, %v134_v39  ;;  %v124_v48 = vadd.f32 0.05243302, %v123_v42 }
  0xaf   :  { %v175_v44 = vadd.f32 0.112945676, %v174_v41  ;;  %v164_v52 = vadd.f32 0.05243302, %v163_v46 }
  0xb0   :  { %v136_v45 = vmul.f32 %v135_v43, %v118_v22  ;;  %v125_v54 = vmul.f32 %v124_v48, %v118_v22 }
  0xb1   :  { %v176_v47 = vmul.f32 %v175_v44, %v158_v23  ;;  %v165_v57 = vmul.f32 %v164_v52, %v158_v23 }
  0xb2   :  { %v137_v49 = vadd.f32 0.4994258, %v136_v45  ;;  %v126_v58 = vadd.f32 0.18741608, %v125_v54 }
  0xb3   :  { %v177_v50 = vadd.f32 0.4994258, %v176_v47  ;;  %v166_v59 = vadd.f32 0.18741608, %v165_v57 }
  0xb4   :  { %v138_v51 = vmul.f32 %v137_v49, %v118_v22  ;;  %v127_v61 = vmul.f32 %v126_v58, %v118_v22 }
  0xb5   :  { %v178_v53 = vmul.f32 %v177_v50, %v158_v23  ;;  %v167_v0 = vmul.f32 %v166_v59, %v158_v23 }
  0xb6   :  { %v139_v55 = vadd.f32 1.0, %v138_v51  ;;  %v128_v3 = vadd.f32 1.1283791, %v127_v61 }
  0xb7   :  { %v179_v56 = vadd.f32 1.0, %v178_v53  ;;  %v168_v9 = vadd.f32 1.1283791, %v167_v0 }
  0xb8   :  { %304 = vrcp.f32 %v139_v55  ;;  %v151_v4 = vand.u32 2147483648, %v139_v55  ;;  %v149_v7 = vand.u32 2147483647, %v139_v55  ;;  %vm145_vm3 = vweird.f32 %v139_v55 }
  0xb9   :  { %306 = vrcp.f32 %v179_v56  ;;  %v191_v8 = vand.u32 2147483648, %v179_v56  ;;  %v189_v11 = vand.u32 2147483647, %v179_v56  ;;  %vm185_vm5 = vweird.f32 %v179_v56 }
  0xba   :  { %v152_v13 = vor.u32 1.1754944e-38, %v151_v4  ;;  %v129_v16 = vmul.f32 %v128_v3, %v455_v18  ;;  %vm150_vm6 = vcmp.eq.f32.partialorder %v149_v7, 8.507059e+37  ;;  %v169_v23 = vmul.f32 %v168_v9, %v458_v19 }
  0xbb   :  { %v192_v21 = vor.u32 1.1754944e-38, %v191_v8  ;;  %vm190_vm8 = vcmp.eq.f32.partialorder %v189_v11, 8.507059e+37  ;;  %308 = vrcp.f32 %v397_v36 }
  0xbe   :  { %v305_v60 = vpop.eup %304 }
  0xbf   :  { %v307_v62 = vpop.eup %306  ;;  %v141_v63 = vmul.f32 %v305_v60, %v139_v55  ;;  %vm146_vm1 = vweird.f32 %v305_v60 }
  0xc0   :  { %v181_v1 = vmul.f32 %v307_v62, %v179_v56  ;;  %vm186_vm2 = vweird.f32 %v307_v62  ;;  %vm147_vm4 = vmor %vm145_vm3, %vm146_vm1 }
  0xc1   :  { %v142_v2 = vsub.f32 1.0, %v141_v63  ;;  %vm187_vm7 = vmor %vm185_vm5, %vm186_vm2  ;;  %v309_v37 = vpop.eup %308 }
  0xc2   :  { %v182_v5 = vsub.f32 1.0, %v181_v1  ;;  %v208_v38 = vmul.f32 32.0, %v309_v37  ;;  %vm212_vm9 = vweird.f32 %v309_v37  ;;  %v302_v1 = vld [vmem:[%s489_s3] ss:$0 sm:$0xff]  ;;  %s398_s3 = smov [#allocation8]  }
  0xc3   :  { %v143_v6 = vmul.f32 %v305_v60, %v142_v2  ;;  %s270_s8 = sshll.u32 %s398_s3, 4  ;;  %s271_s8 = int_to_ptr.vmem [resolvable:$true] %s270_s8 }
  0xc4   :  { %v183_v10 = vmul.f32 %v307_v62, %v182_v5  ;;  %v209_v39 = vsub.f32 1.0, %v208_v38  ;;  %v303_v5 = vld [vmem:[%s490_s4] ss:$0 sm:$0xff] }
  0xc5   :  { %v144_v12 = vadd.f32 %v305_v60, %v143_v6 }
  0xc6   :  { %v184_v14 = vadd.f32 %v307_v62, %v183_v10  ;;  %v210_v40 = vmul.f32 %v309_v37, %v209_v39 }
  0xc7   :  { %v148_v20 = vsel %vm147_vm4, %v305_v60, %v144_v12 }
  0xc8   :  { %v153_v22 = vsel %vm150_vm6, %v152_v13, %v148_v20  ;;  %v188_v24 = vsel %vm187_vm7, %v307_v62, %v184_v14  ;;  %v211_v15 = vadd.f32 %v309_v37, %v210_v40 }
  0xc9   :  { %v154_v25 = vmul.f32 %v153_v22, %v129_v16  ;;  %v193_v26 = vsel %vm190_vm8, %v192_v21, %v188_v24 }
  0xca   :  { %v194_v27 = vmul.f32 %v193_v26, %v169_v23  ;;  %v213_v41 = vsel %vm212_vm9, %v309_v37, %v211_v15 }
  0xcb   :  { %v288_v28 = vclamps-f32 %v154_v25, 1.0 }
  0xcc   :  { %v289_v31 = vclamps-f32 %v194_v27, 1.0 }
  0xcd   :  { %v197_v30 = vadd.f32 1.0, %v288_v28 }
  0xce   :  { %v198_v33 = vadd.f32 1.0, %v289_v31 }
  0xcf   :  { %v199_v32 = vmul.f32 %v197_v30, %v113_v29 }
  0xd0   :  { %v200_v35 = vmul.f32 %v198_v33, %v114_v34 }
  0xd1   :  { %v201_v18 = vsel %vm57_vm0, %v199_v32, 0.0 }
  0xd2   :  { %202 = vadd.xlane.f32.xlu0 %v201_v18  ;;  %v204_v19 = vsel %vm57_vm0, %v200_v35, 0.0 }
  0xda   :  { %205 = vadd.xlane.f32.xlu0 %v204_v19 }
 0x145   :  { %v203_v42 = vpop.xlane.xlu0 %202 }
 0x146   :  { %v214_v43 = vmul.f32 %v213_v41, %v203_v42 }
 0x148   :  { %v216_v44 = vsub.f32 %v199_v32, %v214_v43 }
 0x14a   :  { %v218_v45 = vmul.f32 %v216_v44, %v216_v44 }
 0x14c   :  { %v220_v46 = vsel %vm57_vm0, %v218_v45, 0.0 }
 0x14d   :  { %221 = vadd.xlane.f32.xlu1 %v220_v46  ;;  %v206_v17 = vpop.xlane.xlu0 %205 }
 0x14e   :  { %v215_v47 = vmul.f32 %v213_v41, %v206_v17 }
 0x150   :  { %v217_v48 = vsub.f32 %v200_v35, %v215_v47 }
 0x152   :  { %v219_v49 = vmul.f32 %v217_v48, %v217_v48 }
 0x154   :  { %v223_v50 = vsel %vm57_vm0, %v219_v49, 0.0 }
 0x155   :  { %224 = vadd.xlane.f32.xlu1 %v223_v50 }
 0x1c0   :  { %v222_v51 = vpop.xlane.xlu1 %221 }
 0x1c1   :  { %v226_v52 = vmul.f32 %v222_v51, %v213_v41 }
 0x1c3   :  { %v228_v53 = vadd.f32 1e-12, %v226_v52 }
 0x1c5   :  { %310 = vrsqrt.f32 %v228_v53  ;;  %vm236_vm11 = vweird.f32 %v228_v53 }
 0x1c8   :  { %v225_v54 = vpop.xlane.xlu1 %224 }
 0x1c9   :  { %v227_v55 = vmul.f32 %v225_v54, %v213_v41 }
 0x1cb   :  { %v311_v56 = vpop.eup %310  ;;  %v229_v57 = vadd.f32 1e-12, %v227_v55 }
 0x1cc   :  { %v231_v58 = vmul.f32 %v311_v56, %v228_v53  ;;  %vm237_vm10 = vweird.f32 %v311_v56 }
 0x1cd   :  { %312 = vrsqrt.f32 %v229_v57  ;;  %vm238_vm12 = vmor %vm236_vm11, %vm237_vm10  ;;  %vm246_vm14 = vweird.f32 %v229_v57 }
 0x1ce   :  { %v232_v59 = vmul.f32 %v311_v56, %v231_v58 }
 0x1d0   :  { %v233_v60 = vmul.f32 0.5, %v232_v59 }
 0x1d2   :  { %v234_v61 = vsub.f32 1.5, %v233_v60 }
 0x1d3   :  { %v313_v62 = vpop.eup %312 }
 0x1d4   :  { %v235_v63 = vmul.f32 %v311_v56, %v234_v61  ;;  %v241_v0 = vmul.f32 %v313_v62, %v229_v57  ;;  %vm247_vm13 = vweird.f32 %v313_v62 }
 0x1d5   :  { %vm248_vm15 = vmor %vm246_vm14, %vm247_vm13 }
 0x1d6   :  { %v239_v2 = vsel %vm238_vm12, %v311_v56, %v235_v63  ;;  %v242_v3 = vmul.f32 %v313_v62, %v241_v0 }
 0x1d7   :  { %v250_v4 = vmul.f32 %v239_v2, %v216_v44 }
 0x1d8   :  { %v243_v6 = vmul.f32 0.5, %v242_v3 }
 0x1d9   :  { %v256_v7 = vmul.f32 %v302_v1, %v250_v4 }
 0x1da   :  { %v244_v8 = vsub.f32 1.5, %v243_v6 }
 0x1db   :  { %v262_v9 = vadd.f32 %v303_v5, %v256_v7 }
 0x1dc   :  { %v245_v10 = vmul.f32 %v313_v62, %v244_v8 }
 0x1dd   :  { %264 = vst.msk [vmem:[#allocation8] sm:$0xff] %vm57_vm0, %v262_v9 }
 0x1de   :  { %v249_v11 = vsel %vm248_vm15, %v313_v62, %v245_v10 }
 0x1df   :  { %v251_v12 = vmul.f32 %v249_v11, %v217_v48 }
 0x1e1   :  { %v257_v13 = vmul.f32 %v302_v1, %v251_v12 }
 0x1e3   :  { %v263_v14 = vadd.f32 %v303_v5, %v257_v13 }
 0x1e5   :  { %265 = vst.msk [vmem:[#allocation8 + $0x8] sm:$0xff] %vm57_vm0, %v263_v14 }
 0x1e6   :  { %278 = dma.vmem_to_hbm [thread:$0]  %s271_s8, 256, %s273_s11, [#allocation5], %s393_s26, %s393_s26, %s394_s27  }
 0x1e7   :  { %390 = dma.done.wait [#allocation5], 256  }
 0x1e8   :  { %391 = vsyncadd [#allocation5], 4294967040 }
 0x1e9   :  { %283 = vsyncpa [#allocation4], 1 }
 0x1ea   :  { %284 = vsyncpa [#allocation7], 1 }
 0x1eb   :  { %285 = vsyncpa [#allocation5], 1 }

</bundles_post_ra>
